<compile_context>
chip_gen: v6e
topology: v6e:2x2x1
jax: 0.10.0
libtpu: 0.0.40
codegen_flags: <defaults>
</compile_context>

<pallas_src>
import jax
import jax.numpy as jnp
import numpy as np
from jax.experimental import pallas as pl
from jax.experimental.pallas import tpu as pltpu


def _yolo_decode_kernel(scale_ref, code_ref, gxy_ref, pred_ref, out_ref):
    """Decode one channel-major (R = A*(nc+5), T) tile, computed in f32.

    scale_ref : (R, 1)   per-row multiplicative scale
                         [stride, stride, anchor_w, anchor_h, 1, 1, ...] per anchor
    code_ref  : (R, 1)   per-row channel index within its anchor (0..C5-1), f32
    gxy_ref   : (2, T)   grid-cell offsets already multiplied by stride
    pred_ref  : (1, R, T) raw conv outputs for this (sample, GG-tile)
    out_ref   : (1, R, T) decoded predictions (channel-major, lane-dense)
    """
    p = pred_ref[0].astype(jnp.float32)          # (R, T)
    g = gxy_ref[...].astype(jnp.float32)         # (2, T)
    scale = scale_ref[...]                       # (R, 1)
    code = code_ref[...]                         # (R, 1)

    is_exp = jnp.logical_or(code == 2.0, code == 3.0)        # tw / th rows
    sig = jax.nn.sigmoid(p)
    # exp() only sees the real logits on w/h rows, so conf/class logits can
    # never overflow to inf (and there is no inf*0 later).
    expv = jnp.exp(jnp.where(is_exp, p, 0.0))
    val = jnp.where(is_exp, expv, sig)

    # Additive offset: grid_x*stride on row 0, grid_y*stride on row 1, else 0.
    off = jnp.where(code == 0.0, g[0:1, :],
                    jnp.where(code == 1.0, g[1:2, :], 0.0))
    out_ref[0] = (val * scale + off).astype(out_ref.dtype)


def _choose_gg_tile(gg, max_lanes=1024):
    """Largest 128-multiple divisor of gg (<= max_lanes), else the full extent."""
    if gg % 128 == 0:
        cap = min(max_lanes, gg)
        t = cap - cap % 128
        while t >= 128:
            if gg % t == 0:
                return t
            t -= 128
    return gg


def yolo_layer_forward(x, anchors, num_classes, img_dim, *, max_tile_lanes=1024):
    """x: (N, A*(num_classes+5), G, G) conv output (f32 or bf16), NCHW.

    Returns (output, 0) with output shaped (N, A*G*G, 5 + num_classes),
    matching YOLOLayer.forward(x, targets=None, img_dim=img_dim).
    """
    anchors_np = np.asarray(anchors, dtype=np.float32)          # (A, 2)
    A = anchors_np.shape[0]
    C5 = num_classes + 5
    R = A * C5
    N, C, G, G2 = x.shape
    assert C == R and G == G2
    GG = G * G
    stride = float(img_dim) / float(G)

    # Free reshape: anchors folded into the sublane axis, GG on the lane axis.
    pred = x.reshape(N, R, GG)

    # Per-row metadata (tiny, host-side):
    #   rows 0,1 : (sigmoid + grid)*stride
    #   rows 2,3 : exp * (anchor/stride) * stride == exp * anchor
    #   rows 4.. : plain sigmoid
    row_scale = np.ones((R, 1), dtype=np.float32)
    row_code = np.zeros((R, 1), dtype=np.float32)
    for a in range(A):
        base = a * C5
        row_scale[base + 0, 0] = stride
        row_scale[base + 1, 0] = stride
        row_scale[base + 2, 0] = anchors_np[a, 0]
        row_scale[base + 3, 0] = anchors_np[a, 1]
        row_code[base:base + C5, 0] = np.arange(C5, dtype=np.float32)
    row_scale = jnp.asarray(row_scale)
    row_code = jnp.asarray(row_code)

    # Grid offsets flattened row-major over (row, col), pre-scaled by stride.
    idx = np.arange(GG, dtype=np.int64)
    gxy = jnp.asarray(np.stack([(idx % G).astype(np.float32) * stride,    # grid_x
                                (idx // G).astype(np.float32) * stride]))  # grid_y

    T = _choose_gg_tile(GG, max_tile_lanes)   # lane tile (128-multiple if possible)
    n_gg = GG // T
    grid = (N, n_gg)

    in_specs = [
        pl.BlockSpec((R, 1), lambda n, t: (0, 0)),          # row_scale (resident)
        pl.BlockSpec((R, 1), lambda n, t: (0, 0)),          # row_code  (resident)
        pl.BlockSpec((2, T), lambda n, t: (0, t)),          # stride-scaled offsets
        pl.BlockSpec((1, R, T), lambda n, t: (n, 0, t)),    # raw predictions
    ]
    itemsize = x.dtype.itemsize
    cost = pl.CostEstimate(
        flops=6 * N * R * GG,
        transcendentals=2 * N * R * GG,
        bytes_accessed=2 * N * R * GG * itemsize + R * 8 + 2 * GG * 4)

    out = pl.pallas_call(
        _yolo_decode_kernel,
        out_shape=jax.ShapeDtypeStruct((N, R, GG), x.dtype),
        grid=grid,
        in_specs=in_specs,
        out_specs=pl.BlockSpec((1, R, T), lambda n, t: (n, 0, t)),
        compiler_params=pltpu.CompilerParams(
            dimension_semantics=("parallel", "parallel")),
        cost_estimate=cost,
    )(row_scale, row_code, gxy, pred)

    # One XLA transpose pass to the PyTorch (N, A, GG, C5) row order, then a
    # free reshape to (N, A*GG, C5).  Doing this inside the kernel would force
    # 9-lane masked stores / strided DMA, which is worse than this pass.
    output = jnp.transpose(out.reshape(N, A, C5, GG),
                           (0, 1, 3, 2)).reshape(N, A * GG, C5)

    # TODO(synk): training path (build_targets + MSE/BCE losses, metrics) not
    # implemented; forward with targets=None returns (output, 0) as the module does.
    return output, 0


def _reference_jax(x, anchors, num_classes, img_dim):
    """Pure-JAX transcription of the PyTorch forward for a sanity check."""
    anchors = np.asarray(anchors, dtype=np.float32)
    A = anchors.shape[0]
    C5 = num_classes + 5
    N, _, G, _ = x.shape
    stride = float(img_dim) / float(G)
    pred = jnp.transpose(x.reshape(N, A, C5, G, G), (0, 1, 3, 4, 2))
    sx = jax.nn.sigmoid(pred[..., 0])
    sy = jax.nn.sigmoid(pred[..., 1])
    w = pred[..., 2]
    h = pred[..., 3]
    conf = jax.nn.sigmoid(pred[..., 4])
    cls = jax.nn.sigmoid(pred[..., 5:])
    grid_x = jnp.tile(jnp.arange(G, dtype=jnp.float32), (G, 1)).reshape(1, 1, G, G)
    grid_y = jnp.tile(jnp.arange(G, dtype=jnp.float32), (G, 1)).T.reshape(1, 1, G, G)
    sa = jnp.asarray(anchors / stride)
    aw = sa[:, 0].reshape(1, A, 1, 1)
    ah = sa[:, 1].reshape(1, A, 1, 1)
    boxes = jnp.stack([sx + grid_x, sy + grid_y,
                       jnp.exp(w) * aw, jnp.exp(h) * ah], axis=-1)
    return jnp.concatenate([boxes.reshape(N, -1, 4) * stride,
                            conf.reshape(N, -1, 1),
                            cls.reshape(N, -1, num_classes)], axis=-1)


if __name__ == "__main__":
    num_classes = 4
    anchors = [(10.0, 13.0), (16.0, 30.0), (33.0, 23.0)]
    A = len(anchors)
    C5 = num_classes + 5

    key = jax.random.PRNGKey(0)

    # Case 1: batch=2, 16x16 grid (GG=256 -> lane-dense 128-multiple tiles),
    # img_dim=64 -> stride=4.
    N, G, img_dim = 2, 16, 64
    x = jax.random.normal(key, (N, A * C5, G, G), dtype=jnp.float32)
    out, loss = yolo_layer_forward(x, anchors, num_classes, img_dim)
    out = jax.block_until_ready(out)
    ref = jax.block_until_ready(_reference_jax(x, anchors, num_classes, img_dim))
    np.testing.assert_allclose(np.asarray(out), np.asarray(ref),
                               rtol=1e-5, atol=1e-5)
    assert out.shape == (N, A * G * G, C5)
    assert loss == 0

    # Case 2: 13x13 grid (GG=169, not a 128-multiple -> full-extent lane tile).
    G2, img_dim2 = 13, 416
    x2 = jax.random.normal(jax.random.PRNGKey(0), (N, A * C5, G2, G2),
                           dtype=jnp.float32)
    out2, _ = yolo_layer_forward(x2, anchors, num_classes, img_dim2)
    out2 = jax.block_until_ready(out2)
    ref2 = jax.block_until_ready(_reference_jax(x2, anchors, num_classes, img_dim2))
    np.testing.assert_allclose(np.asarray(out2), np.asarray(ref2),
                               rtol=1e-5, atol=1e-5)

    # Case 3: bf16 over HBM (halves bytes moved); compute stays f32 in-kernel.
    xb = x.astype(jnp.bfloat16)
    outb, _ = yolo_layer_forward(xb, anchors, num_classes, img_dim)
    outb = jax.block_until_ready(outb)
    refb = _reference_jax(xb.astype(jnp.float32), anchors, num_classes, img_dim)
    np.testing.assert_allclose(np.asarray(outb.astype(jnp.float32)),
                               np.asarray(refb), rtol=5e-2, atol=5e-2)

    print("KERNEL_OK")
</pallas_src>

<mosaic_0001>
module attributes {stable_mosaic.version = 11 : i64} {
  func.func @_yolo_decode_kernel(%arg0: i32, %arg1: i32, %arg2: memref<27x1xf32, #tpu.memory_space<vmem>>, %arg3: memref<27x1xf32, #tpu.memory_space<vmem>>, %arg4: memref<2x256xf32, #tpu.memory_space<vmem>>, %arg5: memref<1x27x256xf32, #tpu.memory_space<vmem>>, %arg6: memref<1x27x256xf32, #tpu.memory_space<vmem>>) attributes {dimension_semantics = [#tpu.dimension_semantics<parallel>, #tpu.dimension_semantics<parallel>], iteration_bounds = array<i64: 2, 1>, scalar_prefetch = 0 : i64, scratch_operands = 0 : i64, tpu.core_type = #tpu.core_type<tc>, window_params = [{pipeline_mode = #tpu.pipeline_mode<synchronous>, transform_indices = @transform_0, window_bounds = array<i64: 27, 1>}, {pipeline_mode = #tpu.pipeline_mode<synchronous>, transform_indices = @transform_1, window_bounds = array<i64: 27, 1>}, {transform_indices = @transform_2, window_bounds = array<i64: 2, 256>}, {transform_indices = @transform_3, window_bounds = array<i64: 1, 27, 256>}, {transform_indices = @transform_4, window_bounds = array<i64: 1, 27, 256>}]} {
    %c0 = arith.constant 0 : index
    %c0_0 = arith.constant 0 : index
    %c0_1 = arith.constant 0 : index
    %0 = vector.load %arg5[%c0, %c0_0, %c0_1] : memref<1x27x256xf32, #tpu.memory_space<vmem>>, vector<1x27x256xf32>
    %1 = vector.shape_cast %0 : vector<1x27x256xf32> to vector<27x256xf32>
    %c0_2 = arith.constant 0 : index
    %c0_3 = arith.constant 0 : index
    %2 = vector.load %arg4[%c0_2, %c0_3] : memref<2x256xf32, #tpu.memory_space<vmem>>, vector<2x256xf32>
    %c0_4 = arith.constant 0 : index
    %c0_5 = arith.constant 0 : index
    %3 = vector.load %arg2[%c0_4, %c0_5] : memref<27x1xf32, #tpu.memory_space<vmem>>, vector<27x1xf32>
    %c0_6 = arith.constant 0 : index
    %c0_7 = arith.constant 0 : index
    %4 = vector.load %arg3[%c0_6, %c0_7] : memref<27x1xf32, #tpu.memory_space<vmem>>, vector<27x1xf32>
    %cst = arith.constant 2.000000e+00 : f32
    %5 = vector.broadcast %cst : f32 to vector<27x1xf32>
    %6 = arith.cmpf oeq, %4, %5 : vector<27x1xf32>
    %cst_8 = arith.constant 3.000000e+00 : f32
    %7 = vector.broadcast %cst_8 : f32 to vector<27x1xf32>
    %8 = arith.cmpf oeq, %4, %7 : vector<27x1xf32>
    %9 = arith.ori %6, %8 : vector<27x1xi1>
    %10 = arith.negf %1 : vector<27x256xf32>
    %11 = math.exp %10 : vector<27x256xf32>
    %cst_9 = arith.constant 1.000000e+00 : f32
    %12 = vector.broadcast %cst_9 : f32 to vector<27x256xf32>
    %13 = arith.addf %12, %11 : vector<27x256xf32>
    %14 = arith.divf %12, %13 : vector<27x256xf32>
    %cst_10 = arith.constant 0.000000e+00 : f32
    %15 = vector.shape_cast %9 : vector<27x1xi1> to vector<27x1xi1>
    %16 = vector.broadcast %15 : vector<27x1xi1> to vector<27x256xi1>
    %17 = vector.broadcast %cst_10 : f32 to vector<27x256xf32>
    %18 = arith.select %16, %1, %17 : vector<27x256xi1>, vector<27x256xf32>
    %19 = math.exp %18 : vector<27x256xf32>
    %20 = vector.shape_cast %9 : vector<27x1xi1> to vector<27x1xi1>
    %21 = vector.broadcast %20 : vector<27x1xi1> to vector<27x256xi1>
    %22 = arith.select %21, %19, %14 : vector<27x256xi1>, vector<27x256xf32>
    %cst_11 = arith.constant 0.000000e+00 : f32
    %23 = vector.broadcast %cst_11 : f32 to vector<27x1xf32>
    %24 = arith.cmpf oeq, %4, %23 : vector<27x1xf32>
    %25 = vector.extract_strided_slice %2 {offsets = [0, 0], sizes = [1, 256], strides = [1, 1]} : vector<2x256xf32> to vector<1x256xf32>
    %cst_12 = arith.constant 1.000000e+00 : f32
    %26 = vector.broadcast %cst_12 : f32 to vector<27x1xf32>
    %27 = arith.cmpf oeq, %4, %26 : vector<27x1xf32>
    %28 = vector.extract_strided_slice %2 {offsets = [1, 0], sizes = [1, 256], strides = [1, 1]} : vector<2x256xf32> to vector<1x256xf32>
    %cst_13 = arith.constant 0.000000e+00 : f32
    %29 = vector.shape_cast %27 : vector<27x1xi1> to vector<27x1xi1>
    %30 = vector.broadcast %29 : vector<27x1xi1> to vector<27x256xi1>
    %31 = vector.shape_cast %28 : vector<1x256xf32> to vector<1x256xf32>
    %32 = vector.broadcast %31 : vector<1x256xf32> to vector<27x256xf32>
    %33 = vector.broadcast %cst_13 : f32 to vector<27x256xf32>
    %34 = arith.select %30, %32, %33 : vector<27x256xi1>, vector<27x256xf32>
    %35 = vector.shape_cast %24 : vector<27x1xi1> to vector<27x1xi1>
    %36 = vector.broadcast %35 : vector<27x1xi1> to vector<27x256xi1>
    %37 = vector.shape_cast %25 : vector<1x256xf32> to vector<1x256xf32>
    %38 = vector.broadcast %37 : vector<1x256xf32> to vector<27x256xf32>
    %39 = arith.select %36, %38, %34 : vector<27x256xi1>, vector<27x256xf32>
    %40 = vector.broadcast %3 : vector<27x1xf32> to vector<27x256xf32>
    %41 = arith.mulf %22, %40 : vector<27x256xf32>
    %42 = arith.addf %41, %39 : vector<27x256xf32>
    %c0_14 = arith.constant 0 : index
    %c0_15 = arith.constant 0 : index
    %c0_16 = arith.constant 0 : index
    %43 = vector.load %arg6[%c0_14, %c0_15, %c0_16] : memref<1x27x256xf32, #tpu.memory_space<vmem>>, vector<1x27x256xf32>
    %44 = vector.shape_cast %43 : vector<1x27x256xf32> to vector<27x256xf32>
    %45 = vector.shape_cast %42 : vector<27x256xf32> to vector<1x27x256xf32>
    tpu.vector_store %arg6[%c0_14, %c0_15, %c0_16], %45 {strides = array<i32>} : memref<1x27x256xf32, #tpu.memory_space<vmem>>, vector<1x27x256xf32>,
    return
  }
  func.func @transform_0(%arg0: i32, %arg1: i32) -> (i32, i32) {
    %c0_i32 = arith.constant 0 : i32
    %c0_i32_0 = arith.constant 0 : i32
    %c0_i32_1 = arith.constant 0 : i32
    return %c0_i32, %c0_i32_0 : i32, i32
  }
  func.func @transform_1(%arg0: i32, %arg1: i32) -> (i32, i32) {
    %c0_i32 = arith.constant 0 : i32
    %c0_i32_0 = arith.constant 0 : i32
    %c0_i32_1 = arith.constant 0 : i32
    return %c0_i32, %c0_i32_0 : i32, i32
  }
  func.func @transform_2(%arg0: i32, %arg1: i32) -> (i32, i32) {
    %c0_i32 = arith.constant 0 : i32
    %c0_i32_0 = arith.constant 0 : i32
    return %c0_i32, %arg1 : i32, i32
  }
  func.func @transform_3(%arg0: i32, %arg1: i32) -> (i32, i32, i32) {
    %c0_i32 = arith.constant 0 : i32
    %c0_i32_0 = arith.constant 0 : i32
    return %arg0, %c0_i32, %arg1 : i32, i32, i32
  }
  func.func @transform_4(%arg0: i32, %arg1: i32) -> (i32, i32, i32) {
    %c0_i32 = arith.constant 0 : i32
    %c0_i32_0 = arith.constant 0 : i32
    return %arg0, %c0_i32, %arg1 : i32, i32, i32
  }
}

</mosaic_0001>

<bundles_post_ra>
// kernel: tpu_custom_call.1
= control target key start
LH: loop header
LB: loop body
LE: loop exit
PB: predicated region body
PF: predicated region fallthrough
CT: control target
= control target key end

     0   :  { %s782_s15 = smov 0   ;;  %s784_s16 = smov 0   ;;  %s910_s0 = inlined_call_operand.vmem [shape: f32[27,1], index: 0, kind: input, shape index: {}]   ;;  %s911_s1 = inlined_call_operand.vmem [shape: f32[27,1], index: 1, kind: input, shape index: {}]   ;;  %s912_s2 = inlined_call_operand.vmem [shape: f32[2,256], index: 2, kind: input, shape index: {}]   ;;  %s913_s3 = inlined_call_operand.vmem [shape: f32[2,27,256], index: 3, kind: input, shape index: {}]   ;;  %s914_s4 = inlined_call_operand.vmem [shape: f32[2,27,256], index: 4, kind: output, shape index: {}]  }
   0x1   :  { %s786_s17 = smov 0  }
   0x2 LB: > { %s26_s18 = sadd.s32 1, %s750_s16  ;;  %p640_p0 = scmp.ge.s32.totalorder %s754_s17, 1  ;;  %s754_s17 = sphi %s786_s17, %s14_s17   ;;  %s750_s16 = sphi %s784_s16, %s916_s16   ;;  %s746_s15 = sphi %s782_s15, %s915_s15  }
   0x3   : > { %p28_p1 = scmp.ge.s32.totalorder %s26_s18, 2  ;;  %p194_p2 = scmp.lt.s32.totalorder %s754_s17, 3 }
   0x5   : > { %s918_s18 = smov (%p28_p1, %s26_s18), 0  ;;  %p195_p3 = pnand %p640_p0, %p194_p2 }
   0x6   : > { %p240_p4 = scmp.lt.s32.totalorder (!%p195_p3), %s746_s15, 1 }
   0x7   : > { %198 = sbr.rel (%p195_p3) target bundleno = 174 (0xae), region = 36 }
   0xc   : > { %v274_v0 = vld [vmem:[%s911_s1 + $0x10] sm:$0xff]  ;;  %v272_v1 = vld [vmem:[%s911_s1] sm:$0xff]  ;;  %v275_v2 = vld [vmem:[%s911_s1 + $0x18] sm:$0x7]  ;;  %v756_v3 = vmov 0   ;;  %s920_s15 = smov (!%p240_p4, %s746_s15), 1  ;;  %v417_v55 = vlaneseq }
   0xd   : > { %683 = vset.pattern.permute.xlu1 %v756_v3  ;;  %682 = vset.pattern.permute.xlu0 %v756_v3  ;;  %vm278_vm0 = vcmp.eq.f32.partialorder %v274_v0, 2.0  ;;  %vm282_vm1 = vcmp.eq.f32.partialorder %v274_v0, 3.0  ;;  %vm276_vm2 = vcmp.eq.f32.partialorder %v272_v1, 2.0  ;;  %vm280_vm3 = vcmp.eq.f32.partialorder %v272_v1, 3.0  ;;  %v273_v4 = vld [vmem:[%s911_s1 + $0x8] sm:$0xff]  ;;  %v268_v18 = vld [vmem:[%s910_s0] sm:$0xff] }
   0xe   : > { %vm286_vm4 = vmor %vm278_vm0, %vm282_vm1  ;;  %vm279_vm5 = vcmp.eq.f32.partialorder %v275_v2, 2.0  ;;  %vm283_vm6 = vcmp.eq.f32.partialorder %v275_v2, 3.0  ;;  %vm277_vm7 = vcmp.eq.f32.partialorder %v273_v4, 2.0  ;;  %vm281_vm8 = vcmp.eq.f32.partialorder %v273_v4, 3.0  ;;  %v269_v17 = vld [vmem:[%s910_s0 + $0x8] sm:$0xff]  ;;  %v270_v20 = vld [vmem:[%s910_s0 + $0x10] sm:$0xff] }
   0xf   : > { %v338_v5 = vsel %vm286_vm4, 1, %v756_v3  ;;  %vm284_vm9 = vmor %vm276_vm2, %vm280_vm3  ;;  %vm393_vm12 = vcmp.eq.f32.partialorder %v273_v4, 1.0  ;;  %vm392_vm13 = vcmp.eq.f32.partialorder %v272_v1, 1.0  ;;  %vm395_vm14 = vcmp.eq.f32.partialorder %v275_v2, 1.0  ;;  %v271_v19 = vld [vmem:[%s910_s0 + $0x18] sm:$0x7] }
  0x10   : > { %347 = vperm.xlu1 %683, %v338_v5   ;;  %v336_v6 = vsel %vm284_vm9, 1, %v756_v3  ;;  %vm287_vm10 = vmor %vm279_vm5, %vm283_vm6  ;;  %v397_v9 = vsel %vm393_vm12, 1, %v756_v3  ;;  %v396_v10 = vsel %vm392_vm13, 1, %v756_v3  ;;  %vm394_vm15 = vcmp.eq.f32.partialorder %v274_v0, 1.0  ;;  %s655_s9 = sshll.u32 %s920_s15, 6 }
  0x11   : > { %341 = vperm.xlu0 %682, %v336_v6   ;;  %v339_v7 = vsel %vm287_vm10, 1, %v756_v3  ;;  %vm285_vm11 = vmor %vm277_vm7, %vm281_vm8  ;;  %v399_v11 = vsel %vm395_vm14, 1, %v756_v3  ;;  %v398_v12 = vsel %vm394_vm15, 1, %v756_v3  ;;  %vm389_vm0 = vcmp.eq.f32.partialorder %v273_v4, 0.0  ;;  %s247_s12 = scalar_lea.vmem %s913_s3, %s655_s9  ;;  %s257_s21 = scalar_lea.vmem %s914_s4, %s655_s9 }
  0x12   : > { %v337_v8 = vsel %vm285_vm11, 1, %v756_v3  ;;  %vm388_vm1 = vcmp.eq.f32.partialorder %v272_v1, 0.0  ;;  %v444_v13 = vsel %vm389_vm0, 1, %v756_v3  ;;  %vm391_vm2 = vcmp.eq.f32.partialorder %v275_v2, 0.0  ;;  %v263_v21 = vld [vmem:[%s247_s12 + $0x20] sm:$0xff]  ;;  %v264_v22 = vld [vmem:[%s247_s12 + $0x28] sm:$0xff] }
  0x13   : > { %v443_v14 = vsel %vm388_vm1, 1, %v756_v3  ;;  %vm390_vm3 = vcmp.eq.f32.partialorder %v274_v0, 0.0  ;;  %v446_v15 = vsel %vm391_vm2, 1, %v756_v3  ;;  %v259_v23 = vld [vmem:[%s247_s12] sm:$0xff]  ;;  %v649_v24 = vmul.f32 -1.442695, %v263_v21 }
  0x14   : > { %350 = vperm.xlu1 %683, %v339_v7   ;;  %v445_v16 = vsel %vm390_vm3, 1, %v756_v3  ;;  %v260_v25 = vld [vmem:[%s247_s12 + $0x8] sm:$0xff]  ;;  %v650_v26 = vmul.f32 -1.442695, %v264_v22  ;;  %v265_v27 = vld [vmem:[%s247_s12 + $0x30] sm:$0x7] }
  0x15   : > { %344 = vperm.xlu0 %682, %v337_v8   ;;  %v645_v28 = vmul.f32 -1.442695, %v259_v23  ;;  %v266_v29 = vld [vmem:[%s247_s12 + $0x38] sm:$0x7]  ;;  %v646_v30 = vmul.f32 -1.442695, %v260_v25  ;;  %684 = vpow2.f32 %v649_v24 }
  0x16   : > { %v261_v31 = vld [vmem:[%s247_s12 + $0x10] sm:$0xff]  ;;  %v651_v32 = vmul.f32 -1.442695, %v265_v27  ;;  %v262_v33 = vld [vmem:[%s247_s12 + $0x18] sm:$0xff]  ;;  %686 = vpow2.f32 %v650_v26  ;;  %v652_v34 = vmul.f32 -1.442695, %v266_v29 }
  0x17   : > { %688 = vpow2.f32 %v645_v28  ;;  %v647_v35 = vmul.f32 -1.442695, %v261_v31  ;;  %v648_v36 = vmul.f32 -1.442695, %v262_v33  ;;  %v418_v1 = vshrl.u32 %v417_v55, 7 }
  0x18   : > { %404 = vperm.xlu1 %683, %v397_v9   ;;  %690 = vpow2.f32 %v646_v30 }
  0x19   : > { %401 = vperm.xlu0 %682, %v396_v10   ;;  %692 = vpow2.f32 %v651_v32 }
  0x1a   : > { %694 = vpow2.f32 %v652_v34 }
  0x1b   : > { %696 = vpow2.f32 %v647_v35 }
  0x1c   : > { %410 = vperm.xlu1 %683, %v399_v11   ;;  %698 = vpow2.f32 %v648_v36 }
  0x1d   : > { %407 = vperm.xlu0 %682, %v398_v12  }
  0x20   : > { %451 = vperm.xlu1 %683, %v444_v13   ;;  %v419_v13 = vsub.s32 1, %v418_v1 }
  0x21   : > { %448 = vperm.xlu0 %682, %v443_v14   ;;  %v423_v14 = vsub.s32 3, %v418_v1 }
  0x22   : > { %v685_v37 = vpop.eup %684 }
  0x23   : > { %v687_v38 = vpop.eup %686  ;;  %v316_v41 = vadd.f32 1.0, %v685_v37 }
  0x24   : > { %457 = vperm.xlu1 %683, %v446_v15   ;;  %v689_v39 = vpop.eup %688  ;;  %v317_v43 = vadd.f32 1.0, %v687_v38 }
  0x25   : > { %454 = vperm.xlu0 %682, %v445_v16   ;;  %v691_v40 = vpop.eup %690  ;;  %v312_v45 = vadd.f32 1.0, %v689_v39  ;;  %700 = vrcp.f32 %v316_v41  ;;  %v267_v16 = vld [vmem:[%s912_s2] sm:$0xf] }
  0x26   : > { %v693_v42 = vpop.eup %692  ;;  %v313_v47 = vadd.f32 1.0, %v691_v40  ;;  %702 = vrcp.f32 %v317_v43  ;;  %v420_v24 = vrot.slane %v267_v16, %v419_v13 }
  0x27   : > { %v695_v44 = vpop.eup %694  ;;  %v318_v49 = vadd.f32 1.0, %v693_v42  ;;  %704 = vrcp.f32 %v312_v45 }
  0x28   : > { %496 = vperm.xlu1 %683, %v269_v17   ;;  %v697_v46 = vpop.eup %696  ;;  %v319_v50 = vadd.f32 1.0, %v695_v44  ;;  %706 = vrcp.f32 %v313_v47  ;;  %v430_v34 = vrot.slane %v420_v24, %v419_v13 }
  0x29   : > { %491 = vperm.xlu0 %682, %v268_v18   ;;  %v699_v48 = vpop.eup %698  ;;  %v314_v52 = vadd.f32 1.0, %v697_v46  ;;  %708 = vrcp.f32 %v318_v49 }
  0x2a   : > { %v315_v54 = vadd.f32 1.0, %v699_v48  ;;  %710 = vrcp.f32 %v319_v50 }
  0x2b   : > { %712 = vrcp.f32 %v314_v52 }
  0x2c   : > { %506 = vperm.xlu1 %683, %v271_v19   ;;  %714 = vrcp.f32 %v315_v54  ;;  %v465_v19 = vsub.s32 0, %v418_v1 }
  0x2d   : > { %501 = vperm.xlu0 %682, %v270_v20   ;;  %v469_v20 = vsub.s32 2, %v418_v1 }
  0x2f   : > { %v470_v30 = vrot.slane %v267_v16, %v469_v20 }
  0x31   : > { %v480_v39 = vrot.slane %v470_v30, %v465_v19 }
  0x32   : > { %v701_v15 = vpop.eup %700 }
  0x33   : > { %v867_v17 = vpop.eup %702 }
  0x8b   : > { %v836_v51 = vpop.permute.xlu1 %347 }
  0x8c   : > { %vm354_vm4 = vcmp.eq.s32.totalorder %v836_v51, 1  ;;  %v839_v53 = vpop.permute.xlu0 %341 }
  0x8d   : > { %v360_v56 = vsel %vm354_vm4, %v263_v21, 0.0  ;;  %vm352_vm5 = vcmp.eq.s32.totalorder %v839_v53, 1  ;;  %v361_v63 = vsel %vm354_vm4, %v264_v22, 0.0  ;;  %v705_v21 = vpop.eup %704 }
  0x8e   : > { %v372_v57 = vmul.f32 1.442695, %v360_v56  ;;  %v356_v58 = vsel %vm352_vm5, %v259_v23, 0.0  ;;  %v357_v59 = vsel %vm352_vm5, %v260_v25, 0.0  ;;  %v374_v10 = vmul.f32 1.442695, %v361_v63  ;;  %v707_v23 = vpop.eup %706 }
  0x8f   : > { %v364_v60 = vmul.f32 1.442695, %v356_v58  ;;  %v366_v61 = vmul.f32 1.442695, %v357_v59  ;;  %v848_v62 = vpop.permute.xlu1 %350  ;;  %v424_v25 = vrot.slane %v267_v16, %v423_v14  ;;  %v709_v26 = vpop.eup %708 }
  0x90   : > { %vm355_vm6 = vcmp.eq.s32.totalorder %v848_v62, 1  ;;  %v853_v0 = vpop.permute.xlu0 %344  ;;  %716 = vpow2.f32 %v372_v57 }
  0x91   : > { %v362_v2 = vsel %vm355_vm6, %v265_v27, 0.0  ;;  %v363_v3 = vsel %vm355_vm6, %v266_v29, 0.0  ;;  %vm353_vm7 = vcmp.eq.s32.totalorder %v853_v0, 1  ;;  %718 = vpow2.f32 %v364_v60  ;;  %v711_v27 = vpop.eup %710 }
  0x92   : > { %v376_v4 = vmul.f32 1.442695, %v362_v2  ;;  %v378_v5 = vmul.f32 1.442695, %v363_v3  ;;  %v358_v6 = vsel %vm353_vm7, %v261_v31, 0.0  ;;  %720 = vpow2.f32 %v366_v61  ;;  %v713_v31 = vpop.eup %712 }
  0x93   : > { %v359_v7 = vsel %vm353_vm7, %v262_v33, 0.0  ;;  %v368_v8 = vmul.f32 1.442695, %v358_v6  ;;  %v405_v9 = vpop.permute.xlu1 %404  ;;  %v466_v29 = vrot.slane %v267_v16, %v465_v19  ;;  %v715_v33 = vpop.eup %714  ;;  %v434_v35 = vrot.slane %v424_v25, %v419_v13 }
  0x94   : > { %722 = vpow2.f32 %v376_v4  ;;  %v370_v11 = vmul.f32 1.442695, %v359_v7  ;;  %v402_v12 = vpop.permute.xlu0 %401  ;;  %vm413_vm8 = vcmp.eq.s32.totalorder %v405_v9, 1 }
  0x95   : > { %724 = vpow2.f32 %v378_v5  ;;  %vm412_vm9 = vcmp.eq.s32.totalorder %v402_v12, 1  ;;  %v476_v38 = vrot.slane %v466_v29, %v465_v19  ;;  %v437_v44 = vsel %vm413_vm8, %v430_v34, 0.0 }
  0x96   : > { %726 = vpow2.f32 %v368_v8  ;;  %v438_v45 = vsel %vm413_vm8, %v434_v35, 0.0  ;;  %v435_v46 = vsel %vm412_vm9, %v430_v34, 0.0  ;;  %v436_v47 = vsel %vm412_vm9, %v434_v35, 0.0 }
  0x97   : > { %728 = vpow2.f32 %v370_v11  ;;  %v411_v18 = vpop.permute.xlu1 %410 }
  0x98   : > { %730 = vpow2.f32 %v374_v10  ;;  %v408_v22 = vpop.permute.xlu0 %407  ;;  %vm415_vm10 = vcmp.eq.s32.totalorder %v411_v18, 1 }
  0x99   : > { %vm414_vm11 = vcmp.eq.s32.totalorder %v408_v22, 1  ;;  %v441_v49 = vsel %vm415_vm10, %v430_v34, 0.0  ;;  %v442_v50 = vsel %vm415_vm10, %v434_v35, 0.0 }
  0x9a   : > { %v439_v52 = vsel %vm414_vm11, %v430_v34, 0.0  ;;  %v440_v54 = vsel %vm414_vm11, %v434_v35, 0.0 }
  0x9b   : > { %v452_v28 = vpop.permute.xlu1 %451 }
  0x9c   : > { %v449_v32 = vpop.permute.xlu0 %448  ;;  %vm460_vm12 = vcmp.eq.s32.totalorder %v452_v28, 1 }
  0x9d   : > { %v717_v36 = vpop.eup %716  ;;  %vm459_vm13 = vcmp.eq.s32.totalorder %v449_v32, 1  ;;  %v483_v56 = vsel %vm460_vm12, %v476_v38, %v437_v44  ;;  %v484_v57 = vsel %vm460_vm12, %v480_v39, %v438_v45 }
  0x9e   : > { %v719_v37 = vpop.eup %718  ;;  %v481_v58 = vsel %vm459_vm13, %v476_v38, %v435_v46  ;;  %v482_v59 = vsel %vm459_vm13, %v480_v39, %v436_v47  ;;  %v384_v4 = vsel %vm354_vm4, %v717_v36, %v701_v15 }
  0x9f   : > { %v458_v40 = vpop.permute.xlu1 %457  ;;  %v721_v41 = vpop.eup %720  ;;  %v380_v2 = vsel %vm352_vm5, %v719_v37, %v705_v21 }
  0xa0   : > { %v455_v42 = vpop.permute.xlu0 %454  ;;  %v381_v3 = vsel %vm352_vm5, %v721_v41, %v707_v23  ;;  %vm462_vm14 = vcmp.eq.s32.totalorder %v458_v40, 1 }
  0xa1   : > { %v723_v43 = vpop.eup %722  ;;  %vm461_vm15 = vcmp.eq.s32.totalorder %v455_v42, 1  ;;  %v487_v21 = vsel %vm462_vm14, %v476_v38, %v441_v49  ;;  %v488_v22 = vsel %vm462_vm14, %v480_v39, %v442_v50 }
  0xa2   : > { %v725_v48 = vpop.eup %724  ;;  %v386_v53 = vsel %vm355_vm6, %v723_v43, %v709_v26  ;;  %v485_v62 = vsel %vm461_vm15, %v476_v38, %v439_v52  ;;  %v486_v25 = vsel %vm461_vm15, %v480_v39, %v440_v54 }
  0xa3   : > { %v727_v55 = vpop.eup %726  ;;  %v497_v60 = vpop.permute.xlu1 %496  ;;  %v387_v0 = vsel %vm355_vm6, %v725_v48, %v711_v27 }
  0xa4   : > { %v729_v61 = vpop.eup %728  ;;  %v382_v63 = vsel %vm353_vm7, %v727_v55, %v713_v31  ;;  %v492_v1 = vpop.permute.xlu0 %491 }
  0xa5   : > { %v731_v5 = vpop.eup %730  ;;  %v383_v6 = vsel %vm353_vm7, %v729_v61, %v715_v33  ;;  %v511_v7 = vmul.f32 %v497_v60, %v382_v63  ;;  %v509_v8 = vmul.f32 %v492_v1, %v380_v2  ;;  %v510_v9 = vmul.f32 %v492_v1, %v381_v3 }
  0xa6   : > { %v512_v10 = vmul.f32 %v497_v60, %v383_v6  ;;  %v385_v20 = vsel %vm354_vm4, %v731_v5, %v867_v17 }
  0xa7   : > { %v519_v11 = vadd.f32 %v511_v7, %v483_v56  ;;  %v517_v12 = vadd.f32 %v509_v8, %v481_v58  ;;  %v518_v13 = vadd.f32 %v510_v9, %v482_v59  ;;  %v507_v14 = vpop.permute.xlu1 %506 }
  0xa8   : > { %v520_v15 = vadd.f32 %v512_v10, %v484_v57  ;;  %v515_v16 = vmul.f32 %v507_v14, %v386_v53  ;;  %v516_v18 = vmul.f32 %v507_v14, %v387_v0  ;;  %v502_v19 = vpop.permute.xlu0 %501 }
  0xa9   : > { %527 = vst [vmem:[%s257_s21 + $0x10] sm:$0xff] %v519_v11  ;;  %525 = vst [vmem:[%s257_s21] sm:$0xff] %v517_v12  ;;  %v513_v23 = vmul.f32 %v502_v19, %v384_v4  ;;  %v514_v24 = vmul.f32 %v502_v19, %v385_v20 }
  0xaa   : > { %526 = vst [vmem:[%s257_s21 + $0x8] sm:$0xff] %v518_v13  ;;  %528 = vst [vmem:[%s257_s21 + $0x18] sm:$0xff] %v520_v15  ;;  %v523_v26 = vadd.f32 %v515_v16, %v487_v21  ;;  %v524_v27 = vadd.f32 %v516_v18, %v488_v22 }
  0xab   : > { %v521_v28 = vadd.f32 %v513_v23, %v485_v62  ;;  %v522_v29 = vadd.f32 %v514_v24, %v486_v25 }
  0xac   : > { %531 = vst [vmem:[%s257_s21 + $0x30] sm:$0x7] %v523_v26  ;;  %532 = vst [vmem:[%s257_s21 + $0x38] sm:$0x7] %v524_v27 }
  0xad   : > { %529 = vst [vmem:[%s257_s21 + $0x20] sm:$0xff] %v521_v28  ;;  %530 = vst [vmem:[%s257_s21 + $0x28] sm:$0xff] %v522_v29 }
  0xae PF: > { %s14_s17 = sadd.s32 1, %s754_s17   ;;  %s915_s15 = smov %s750_s16 }
  0xaf   : > { %p11_p5 = scmp.ge.s32.totalorder %s14_s17, 4   ;;  %s916_s16 = smov %s918_s18 }
  0xb1   :  { %13 = sbr.rel (!%p11_p5) target bundleno = 2 (0x2), region = 69 }

</bundles_post_ra>
